<compile_context>
chip_gen: v7x
topology: tpu7x:2x2x1
jax: 0.10.0
libtpu: 0.0.40
codegen_flags: <defaults>
</compile_context>

<pallas_src>
import functools

import jax
import jax.numpy as jnp
from jax import lax
from jax.experimental import pallas as pl
from jax.experimental.pallas import tpu as pltpu

EPS = 1e-8  # torch.cosine_similarity default eps (clamped per-norm, like PyTorch)


# --------------------------- fused FeatureAdapter + forecast kernel --------------------------- #
def _double_adapt_kernel(
    x_ref,      # [RB, F]    rows of X for this batch tile (RB = tb * L)
    phat_ref,   # [F, H]     P / max(||P||, eps), pre-transposed
    wcat_ref,   # [F, H*F]   all head weights, contraction (in) dim first
    bcat_ref,   # [1, H*F]   all head biases, concatenated
    gexp_ref,   # [H, H*F]   gate expansion (0/1): (s @ gexp)[r, h*F+g] = s[r, h]
    gred_ref,   # [H*F, F]   head reduction (0/1): sums the H per-head F-blocks
    wm_ref,     # [RB, F]    forecast weight, reshaped [L, F] and tiled tb times
    seg_ref,    # [tb, RB]   per-batch row segment-sum matrix
    bm_ref,     # [1, 1]     forecast bias
    xa_ref,     # out: [RB, F]   adapted features
    y_ref,      # out: [tb, 1]   forecast
    *,
    inv_temperature,
):
    x = x_ref[...].astype(jnp.float32)                                  # [RB, F]

    # ---- cosine gates (x side only; P is pre-normalised in the wrapper) ----
    xn2 = jnp.sum(x * x, axis=-1, keepdims=True)                        # [RB, 1]
    x_hat = x * lax.rsqrt(jnp.maximum(xn2, EPS * EPS))                  # x / max(||x||, eps)
    s_hat = jnp.dot(x_hat, phat_ref[...], preferred_element_type=jnp.float32)  # [RB, H]

    # softmax over heads (temperature-scaled), EUP reciprocal for the denominator
    z = s_hat * inv_temperature
    z = z - jnp.max(z, axis=-1, keepdims=True)
    e = jnp.exp(z)
    s = e * pl.reciprocal(jnp.sum(e, axis=-1, keepdims=True), approx=False)     # [RB, H]

    # ---- all H heads in ONE lane-dense MXU matmul: [RB,F] x [F,H*F] ----
    heads = jnp.dot(x, wcat_ref[...], preferred_element_type=jnp.float32) + bcat_ref[...]   # [RB, H*F]
    gates = jnp.dot(s, gexp_ref[...], preferred_element_type=jnp.float32)                   # [RB, H*F]
    xa = x + jnp.dot(heads * gates, gred_ref[...], preferred_element_type=jnp.float32)      # [RB, F]
    xa_ref[...] = xa.astype(xa_ref.dtype)

    # ---- fused forecast head: y[b] = <X_adapt[b].reshape(-1), W_model> + b_model ----
    row_dot = jnp.sum(xa * wm_ref[...], axis=-1, keepdims=True)                             # [RB, 1]
    y = jnp.dot(seg_ref[...], row_dot, preferred_element_type=jnp.float32) + bm_ref[...]    # [tb, 1]
    y_ref[...] = y.astype(y_ref.dtype)


# --------------------------- forecast-only kernel (transform=False path) --------------------------- #
def _forecast_kernel(x_ref, wm_ref, seg_ref, bm_ref, y_ref):
    x = x_ref[...].astype(jnp.float32)
    row_dot = jnp.sum(x * wm_ref[...], axis=-1, keepdims=True)
    y = jnp.dot(seg_ref[...], row_dot, preferred_element_type=jnp.float32) + bm_ref[...]
    y_ref[...] = y.astype(y_ref.dtype)


# --------------------------------------- wrappers --------------------------------------- #
def _pick_batch_tile(B, L, F, H, itemsize=4, budget_bytes=10 * 1024 * 1024):
    """Largest divisor of B that keeps the per-step VMEM footprint under budget.
    Restricted to tb == B or tb % 8 == 0 so every block obeys TPU sublane tiling."""
    HF = H * F

    def fits(tb):
        rb = tb * L
        io_blocks = 2 * 2 * rb * F + 2 * tb                       # double-buffered x/xa (+ y)
        resident = F * H + F * HF + HF + H * HF + HF * F + rb * F + tb * rb + 1
        return (io_blocks + resident) * itemsize <= budget_bytes

    candidates = [d for d in range(B, 0, -1) if B % d == 0 and (d == B or d % 8 == 0)]
    for tb in candidates:
        if fits(tb):
            return tb
    return candidates[-1]  # smallest legal tile; still correct


def _compiler_params():
    # 32 MiB is within the default scoped VMEM on v6e/v7x and well under v5e's physical
    # 128 MiB; the batch-tile picker keeps the footprint far below this anyway.
    return pltpu.CompilerParams(
        dimension_semantics=("parallel",),
        vmem_limit_bytes=32 * 1024 * 1024,
    )


def feature_adapt_and_forecast(X, params, batch_tile=None):
    """X: [B, L, F] -> (y_hat [B], X_adapt [B, L, F]) with a single fused pallas_call."""
    B, L, F = X.shape
    H = params["P"].shape[0]
    HF = H * F
    f32 = jnp.float32

    P = params["P"].astype(f32)
    W_heads = params["W_heads"].astype(f32)         # torch layout: [H, out, in]
    b_heads = params["b_heads"].astype(f32)         # [H, F]
    W_model = params["W_model"].astype(f32)         # [1, L*F]
    b_model = params["b_model"].astype(f32)         # [1, 1]
    inv_temperature = 1.0 / float(params["temperature"])

    # ---- one-time layout plumbing (all transposes / normalisation outside the kernel) ----
    p_norm = jnp.sqrt(jnp.sum(P * P, axis=-1, keepdims=True))
    p_hat_t = (P / jnp.maximum(p_norm, EPS)).T                           # [F, H]
    w_cat = jnp.transpose(W_heads, (2, 0, 1)).reshape(F, HF)             # [F, H*F] in-dim first
    b_cat = b_heads.reshape(1, HF)                                       # [1, H*F]
    gate_expand = jnp.repeat(jnp.eye(H, dtype=f32), F, axis=1)           # [H, H*F]
    gate_reduce = jnp.tile(jnp.eye(F, dtype=f32), (H, 1))                # [H*F, F]

    tb = batch_tile if batch_tile is not None else _pick_batch_tile(B, L, F, H)
    assert B % tb == 0, "batch tile must divide the batch size"
    RB = tb * L

    wm_tiled = jnp.tile(W_model.reshape(L, F), (tb, 1))                  # [RB, F]
    seg_sum = jnp.kron(jnp.eye(tb, dtype=f32), jnp.ones((1, L), f32))    # [tb, RB]

    x_rows = X.reshape(B * L, F)
    kern = functools.partial(_double_adapt_kernel, inv_temperature=inv_temperature)

    xa_rows, y = pl.pallas_call(
        kern,
        out_shape=(
            jax.ShapeDtypeStruct((B * L, F), X.dtype),
            jax.ShapeDtypeStruct((B, 1), X.dtype),
        ),
        grid_spec=pltpu.PrefetchScalarGridSpec(
            num_scalar_prefetch=0,
            grid=(B // tb,),
            in_specs=[
                pl.BlockSpec((RB, F), lambda i: (i, 0)),     # X rows (tiled over batch)
                pl.BlockSpec((F, H), lambda i: (0, 0)),      # normalised prototypes (resident)
                pl.BlockSpec((F, HF), lambda i: (0, 0)),     # merged head weights  (resident)
                pl.BlockSpec((1, HF), lambda i: (0, 0)),     # merged head biases   (resident)
                pl.BlockSpec((H, HF), lambda i: (0, 0)),     # gate expand          (resident)
                pl.BlockSpec((HF, F), lambda i: (0, 0)),     # gate reduce          (resident)
                pl.BlockSpec((RB, F), lambda i: (0, 0)),     # tiled forecast weight
                pl.BlockSpec((tb, RB), lambda i: (0, 0)),    # per-batch segment sum
                pl.BlockSpec((1, 1), lambda i: (0, 0)),      # forecast bias
            ],
            out_specs=(
                pl.BlockSpec((RB, F), lambda i: (i, 0)),     # X_adapt rows
                pl.BlockSpec((tb, 1), lambda i: (i, 0)),     # y_hat
            ),
        ),
        compiler_params=_compiler_params(),
    )(x_rows, p_hat_t, w_cat, b_cat, gate_expand, gate_reduce, wm_tiled, seg_sum,
      b_model.reshape(1, 1))

    return y.reshape(-1), xa_rows.reshape(B, L, F)


def forecast_only(X, W_model, b_model, batch_tile=None):
    """ForecastModel.forward without the feature adapter: y = Linear(x_dim, 1)(X.reshape(B, -1))."""
    if X.ndim == 3:
        B, L, F = X.shape
    else:
        B, D = X.shape
        L, F = 1, D
    f32 = jnp.float32

    tb = batch_tile if batch_tile is not None else _pick_batch_tile(B, L, F, 1)
    assert B % tb == 0
    RB = tb * L

    wm_tiled = jnp.tile(W_model.astype(f32).reshape(L, F), (tb, 1))      # [RB, F]
    seg_sum = jnp.kron(jnp.eye(tb, dtype=f32), jnp.ones((1, L), f32))    # [tb, RB]
    x_rows = X.reshape(B * L, F)

    y = pl.pallas_call(
        _forecast_kernel,
        out_shape=jax.ShapeDtypeStruct((B, 1), X.dtype),
        grid_spec=pltpu.PrefetchScalarGridSpec(
            num_scalar_prefetch=0,
            grid=(B // tb,),
            in_specs=[
                pl.BlockSpec((RB, F), lambda i: (i, 0)),
                pl.BlockSpec((RB, F), lambda i: (0, 0)),
                pl.BlockSpec((tb, RB), lambda i: (0, 0)),
                pl.BlockSpec((1, 1), lambda i: (0, 0)),
            ],
            out_specs=pl.BlockSpec((tb, 1), lambda i: (i, 0)),
        ),
        compiler_params=_compiler_params(),
    )(x_rows, wm_tiled, seg_sum, b_model.astype(f32).reshape(1, 1))
    return y.reshape(-1)


# --------------------------------------- DoubleAdapt.forward --------------------------------------- #
def double_adapt_forward(X, params, transform=True, batch_tile=None):
    if transform:
        assert X.ndim == 3, "transform=True expects X of shape [batch, seq_len, factor_num]"
        return feature_adapt_and_forecast(X, params, batch_tile=batch_tile)
    y_hat = forecast_only(X, params["W_model"], params["b_model"], batch_tile=batch_tile)
    return y_hat, X


# --------------------------------------- pure-JAX reference --------------------------------------- #
def _ref_forward(X, params):
    B, L, F = X.shape
    x = X.reshape(B * L, F)
    P, W, b = params["P"], params["W_heads"], params["b_heads"]
    xn = jnp.sqrt(jnp.sum(x * x, -1, keepdims=True))
    pn = jnp.sqrt(jnp.sum(P * P, -1, keepdims=True))
    # torch.cosine_similarity clamps each norm separately
    cos = (x / jnp.maximum(xn, EPS)) @ (P / jnp.maximum(pn, EPS)).T
    s = jax.nn.softmax(cos / params["temperature"], axis=-1)
    heads = jnp.einsum("nf,hgf->nhg", x, W) + b[None]
    xa = x + jnp.sum(s[..., None] * heads, axis=1)
    Xa = xa.reshape(B, L, F)
    y = (Xa.reshape(B, -1) @ params["W_model"].T + params["b_model"]).reshape(-1)
    return y, Xa


if __name__ == "__main__":
    key = jax.random.PRNGKey(0)
    B, L, F, H = 4, 8, 16, 8           # batch, seq_len, factor_num, num_head (DoubleAdapt default H=8)
    temperature = 10.0                 # DoubleAdapt default
    x_dim = L * F

    k = jax.random.split(key, 6)
    X = jax.random.normal(k[0], (B, L, F), jnp.float32)

    # FeatureAdapter params (kaiming_uniform(a=sqrt(5)) -> U(-1/sqrt(F), 1/sqrt(F)))
    bound = 1.0 / (F ** 0.5)
    P = jax.random.uniform(k[1], (H, F), jnp.float32, -bound, bound)
    W_heads = jax.random.uniform(k[2], (H, F, F), jnp.float32, -bound, bound)
    b_heads = jax.random.uniform(k[3], (H, F), jnp.float32, -bound, bound)

    # Forecast model = Linear(x_dim, 1)
    mb = 1.0 / (x_dim ** 0.5)
    W_model = jax.random.uniform(k[4], (1, x_dim), jnp.float32, -mb, mb)
    b_model = jax.random.uniform(k[5], (1, 1), jnp.float32, -mb, mb)

    params = dict(
        P=P, W_heads=W_heads, b_heads=b_heads,
        W_model=W_model, b_model=b_model, temperature=temperature,
    )

    # transform=True path (FeatureAdapter + forecast, fused in one kernel)
    y_hat, X_adapt = double_adapt_forward(X, params, transform=True)
    jax.block_until_ready((y_hat, X_adapt))

    y_ref, X_ref = _ref_forward(X, params)
    assert y_hat.shape == (B,) and X_adapt.shape == (B, L, F)
    assert jnp.allclose(X_adapt, X_ref, atol=1e-5, rtol=1e-5)
    assert jnp.allclose(y_hat, y_ref, atol=1e-5, rtol=1e-5)

    # transform=False path (forecast model only)
    y0, X0 = double_adapt_forward(X, params, transform=False)
    jax.block_until_ready(y0)
    y0_ref = (X.reshape(B, -1) @ W_model.T + b_model).reshape(-1)
    assert jnp.allclose(y0, y0_ref, atol=1e-5, rtol=1e-5)

    print("KERNEL_OK")
</pallas_src>

<mosaic_0001>
module attributes {stable_mosaic.version = 11 : i64} {
  func.func @_double_adapt_kernel(%arg0: i32, %arg1: memref<32x16xf32, #tpu.memory_space<vmem>>, %arg2: memref<16x8xf32, #tpu.memory_space<vmem>>, %arg3: memref<16x128xf32, #tpu.memory_space<vmem>>, %arg4: memref<1x128xf32, #tpu.memory_space<vmem>>, %arg5: memref<8x128xf32, #tpu.memory_space<vmem>>, %arg6: memref<128x16xf32, #tpu.memory_space<vmem>>, %arg7: memref<32x16xf32, #tpu.memory_space<vmem>>, %arg8: memref<4x32xf32, #tpu.memory_space<vmem>>, %arg9: memref<1x1xf32, #tpu.memory_space<vmem>>, %arg10: memref<32x16xf32, #tpu.memory_space<vmem>>, %arg11: memref<4x1xf32, #tpu.memory_space<vmem>>) attributes {dimension_semantics = [#tpu.dimension_semantics<parallel>], iteration_bounds = array<i64: 1>, scalar_prefetch = 0 : i64, scratch_operands = 0 : i64, tpu.core_type = #tpu.core_type<tc>, window_params = [{transform_indices = @transform_0, window_bounds = array<i64: 32, 16>}, {pipeline_mode = #tpu.pipeline_mode<synchronous>, transform_indices = @transform_1, window_bounds = array<i64: 16, 8>}, {pipeline_mode = #tpu.pipeline_mode<synchronous>, transform_indices = @transform_2, window_bounds = array<i64: 16, 128>}, {pipeline_mode = #tpu.pipeline_mode<synchronous>, transform_indices = @transform_3, window_bounds = array<i64: 1, 128>}, {pipeline_mode = #tpu.pipeline_mode<synchronous>, transform_indices = @transform_4, window_bounds = array<i64: 8, 128>}, {pipeline_mode = #tpu.pipeline_mode<synchronous>, transform_indices = @transform_5, window_bounds = array<i64: 128, 16>}, {pipeline_mode = #tpu.pipeline_mode<synchronous>, transform_indices = @transform_6, window_bounds = array<i64: 32, 16>}, {pipeline_mode = #tpu.pipeline_mode<synchronous>, transform_indices = @transform_7, window_bounds = array<i64: 4, 32>}, {pipeline_mode = #tpu.pipeline_mode<synchronous>, transform_indices = @transform_8, window_bounds = array<i64: 1, 1>}, {transform_indices = @transform_9, window_bounds = array<i64: 32, 16>}, {transform_indices = @transform_10, window_bounds = array<i64: 4, 1>}]} {
    %c0 = arith.constant 0 : index
    %c0_0 = arith.constant 0 : index
    %0 = vector.load %arg1[%c0, %c0_0] : memref<32x16xf32, #tpu.memory_space<vmem>>, vector<32x16xf32>
    %1 = arith.mulf %0, %0 : vector<32x16xf32>
    %cst = arith.constant dense<0.000000e+00> : vector<32xf32>
    %2 = vector.multi_reduction <add>, %1, %cst [1] : vector<32x16xf32> to vector<32xf32>
    %3 = vector.shape_cast %2 : vector<32xf32> to vector<32x1xf32>
    %cst_1 = arith.constant 1.000000e-16 : f32
    %4 = vector.broadcast %cst_1 : f32 to vector<32x1xf32>
    %5 = arith.maximumf %3, %4 : vector<32x1xf32>
    %6 = math.rsqrt %5 : vector<32x1xf32>
    %7 = vector.broadcast %6 : vector<32x1xf32> to vector<32x16xf32>
    %8 = arith.mulf %0, %7 : vector<32x16xf32>
    %c0_2 = arith.constant 0 : index
    %c0_3 = arith.constant 0 : index
    %9 = vector.load %arg2[%c0_2, %c0_3] : memref<16x8xf32, #tpu.memory_space<vmem>>, vector<16x8xf32>
    %cst_4 = arith.constant dense<0.000000e+00> : vector<32x8xf32>
    %10 = tpu.matmul %8, %9, %cst_4 {dimension_numbers = #tpu.dot_dimension_numbers<[1], [0], [0], [1], [0, 0, 1, 1], [], []>} : vector<32x16xf32>, vector<16x8xf32>, vector<32x8xf32> -> vector<32x8xf32>
    %cst_5 = arith.constant 1.000000e-01 : f32
    %11 = vector.broadcast %cst_5 : f32 to vector<32x8xf32>
    %12 = arith.mulf %10, %11 : vector<32x8xf32>
    %cst_6 = arith.constant dense<0xFF800000> : vector<32xf32>
    %13 = vector.multi_reduction <maximumf>, %12, %cst_6 [1] : vector<32x8xf32> to vector<32xf32>
    %14 = vector.shape_cast %13 : vector<32xf32> to vector<32x1xf32>
    %15 = vector.broadcast %14 : vector<32x1xf32> to vector<32x8xf32>
    %16 = arith.subf %12, %15 : vector<32x8xf32>
    %17 = math.exp %16 : vector<32x8xf32>
    %cst_7 = arith.constant dense<0.000000e+00> : vector<32xf32>
    %18 = vector.multi_reduction <add>, %17, %cst_7 [1] : vector<32x8xf32> to vector<32xf32>
    %19 = vector.shape_cast %18 : vector<32xf32> to vector<32x1xf32>
    %20 = tpu.reciprocal %19 : vector<32x1xf32> -> vector<32x1xf32>
    %21 = vector.broadcast %20 : vector<32x1xf32> to vector<32x8xf32>
    %22 = arith.mulf %17, %21 : vector<32x8xf32>
    %c0_8 = arith.constant 0 : index
    %c0_9 = arith.constant 0 : index
    %23 = vector.load %arg3[%c0_8, %c0_9] : memref<16x128xf32, #tpu.memory_space<vmem>>, vector<16x128xf32>
    %cst_10 = arith.constant dense<0.000000e+00> : vector<32x128xf32>
    %24 = tpu.matmul %0, %23, %cst_10 {dimension_numbers = #tpu.dot_dimension_numbers<[1], [0], [0], [1], [0, 0, 1, 1], [], []>} : vector<32x16xf32>, vector<16x128xf32>, vector<32x128xf32> -> vector<32x128xf32>
    %c0_11 = arith.constant 0 : index
    %c0_12 = arith.constant 0 : index
    %25 = vector.load %arg4[%c0_11, %c0_12] : memref<1x128xf32, #tpu.memory_space<vmem>>, vector<1x128xf32>
    %26 = vector.broadcast %25 : vector<1x128xf32> to vector<32x128xf32>
    %27 = arith.addf %24, %26 : vector<32x128xf32>
    %c0_13 = arith.constant 0 : index
    %c0_14 = arith.constant 0 : index
    %28 = vector.load %arg5[%c0_13, %c0_14] : memref<8x128xf32, #tpu.memory_space<vmem>>, vector<8x128xf32>
    %cst_15 = arith.constant dense<0.000000e+00> : vector<32x128xf32>
    %29 = tpu.matmul %22, %28, %cst_15 {dimension_numbers = #tpu.dot_dimension_numbers<[1], [0], [0], [1], [0, 0, 1, 1], [], []>} : vector<32x8xf32>, vector<8x128xf32>, vector<32x128xf32> -> vector<32x128xf32>
    %30 = arith.mulf %27, %29 : vector<32x128xf32>
    %c0_16 = arith.constant 0 : index
    %c0_17 = arith.constant 0 : index
    %31 = vector.load %arg6[%c0_16, %c0_17] : memref<128x16xf32, #tpu.memory_space<vmem>>, vector<128x16xf32>
    %cst_18 = arith.constant dense<0.000000e+00> : vector<32x16xf32>
    %32 = tpu.matmul %30, %31, %cst_18 {dimension_numbers = #tpu.dot_dimension_numbers<[1], [0], [0], [1], [0, 0, 1, 1], [], []>} : vector<32x128xf32>, vector<128x16xf32>, vector<32x16xf32> -> vector<32x16xf32>
    %33 = arith.addf %0, %32 : vector<32x16xf32>
    %c0_19 = arith.constant 0 : index
    %c0_20 = arith.constant 0 : index
    %34 = vector.load %arg10[%c0_19, %c0_20] : memref<32x16xf32, #tpu.memory_space<vmem>>, vector<32x16xf32>
    tpu.vector_store %arg10[%c0_19, %c0_20], %33 {strides = array<i32>} : memref<32x16xf32, #tpu.memory_space<vmem>>, vector<32x16xf32>,
    %c0_21 = arith.constant 0 : index
    %c0_22 = arith.constant 0 : index
    %35 = vector.load %arg7[%c0_21, %c0_22] : memref<32x16xf32, #tpu.memory_space<vmem>>, vector<32x16xf32>
    %36 = arith.mulf %33, %35 : vector<32x16xf32>
    %cst_23 = arith.constant dense<0.000000e+00> : vector<32xf32>
    %37 = vector.multi_reduction <add>, %36, %cst_23 [1] : vector<32x16xf32> to vector<32xf32>
    %38 = vector.shape_cast %37 : vector<32xf32> to vector<32x1xf32>
    %c0_24 = arith.constant 0 : index
    %c0_25 = arith.constant 0 : index
    %39 = vector.load %arg8[%c0_24, %c0_25] : memref<4x32xf32, #tpu.memory_space<vmem>>, vector<4x32xf32>
    %cst_26 = arith.constant dense<0.000000e+00> : vector<4x1xf32>
    %40 = tpu.matmul %39, %38, %cst_26 {dimension_numbers = #tpu.dot_dimension_numbers<[1], [0], [0], [1], [0, 0, 1, 1], [], []>} : vector<4x32xf32>, vector<32x1xf32>, vector<4x1xf32> -> vector<4x1xf32>
    %c0_27 = arith.constant 0 : index
    %c0_28 = arith.constant 0 : index
    %41 = vector.load %arg9[%c0_27, %c0_28] : memref<1x1xf32, #tpu.memory_space<vmem>>, vector<1x1xf32>
    %42 = vector.broadcast %41 : vector<1x1xf32> to vector<4x1xf32>
    %43 = arith.addf %40, %42 : vector<4x1xf32>
    %c0_29 = arith.constant 0 : index
    %c0_30 = arith.constant 0 : index
    %44 = vector.load %arg11[%c0_29, %c0_30] : memref<4x1xf32, #tpu.memory_space<vmem>>, vector<4x1xf32>
    tpu.vector_store %arg11[%c0_29, %c0_30], %43 {strides = array<i32>} : memref<4x1xf32, #tpu.memory_space<vmem>>, vector<4x1xf32>,
    return
  }
  func.func @transform_0(%arg0: i32) -> (i32, i32) {
    %c0_i32 = arith.constant 0 : i32
    %c0_i32_0 = arith.constant 0 : i32
    return %arg0, %c0_i32 : i32, i32
  }
  func.func @transform_1(%arg0: i32) -> (i32, i32) {
    %c0_i32 = arith.constant 0 : i32
    %c0_i32_0 = arith.constant 0 : i32
    %c0_i32_1 = arith.constant 0 : i32
    return %c0_i32, %c0_i32_0 : i32, i32
  }
  func.func @transform_2(%arg0: i32) -> (i32, i32) {
    %c0_i32 = arith.constant 0 : i32
    %c0_i32_0 = arith.constant 0 : i32
    %c0_i32_1 = arith.constant 0 : i32
    return %c0_i32, %c0_i32_0 : i32, i32
  }
  func.func @transform_3(%arg0: i32) -> (i32, i32) {
    %c0_i32 = arith.constant 0 : i32
    %c0_i32_0 = arith.constant 0 : i32
    %c0_i32_1 = arith.constant 0 : i32
    return %c0_i32, %c0_i32_0 : i32, i32
  }
  func.func @transform_4(%arg0: i32) -> (i32, i32) {
    %c0_i32 = arith.constant 0 : i32
    %c0_i32_0 = arith.constant 0 : i32
    %c0_i32_1 = arith.constant 0 : i32
    return %c0_i32, %c0_i32_0 : i32, i32
  }
  func.func @transform_5(%arg0: i32) -> (i32, i32) {
    %c0_i32 = arith.constant 0 : i32
    %c0_i32_0 = arith.constant 0 : i32
    %c0_i32_1 = arith.constant 0 : i32
    return %c0_i32, %c0_i32_0 : i32, i32
  }
  func.func @transform_6(%arg0: i32) -> (i32, i32) {
    %c0_i32 = arith.constant 0 : i32
    %c0_i32_0 = arith.constant 0 : i32
    %c0_i32_1 = arith.constant 0 : i32
    return %c0_i32, %c0_i32_0 : i32, i32
  }
  func.func @transform_7(%arg0: i32) -> (i32, i32) {
    %c0_i32 = arith.constant 0 : i32
    %c0_i32_0 = arith.constant 0 : i32
    %c0_i32_1 = arith.constant 0 : i32
    return %c0_i32, %c0_i32_0 : i32, i32
  }
  func.func @transform_8(%arg0: i32) -> (i32, i32) {
    %c0_i32 = arith.constant 0 : i32
    %c0_i32_0 = arith.constant 0 : i32
    %c0_i32_1 = arith.constant 0 : i32
    return %c0_i32, %c0_i32_0 : i32, i32
  }
  func.func @transform_9(%arg0: i32) -> (i32, i32) {
    %c0_i32 = arith.constant 0 : i32
    %c0_i32_0 = arith.constant 0 : i32
    return %arg0, %c0_i32 : i32, i32
  }
  func.func @transform_10(%arg0: i32) -> (i32, i32) {
    %c0_i32 = arith.constant 0 : i32
    %c0_i32_0 = arith.constant 0 : i32
    return %arg0, %c0_i32 : i32, i32
  }
}

</mosaic_0001>

<bundles_post_ra>
// kernel: tpu_custom_call.1
= control target key start
LH: loop header
LB: loop body
LE: loop exit
PB: predicated region body
PF: predicated region fallthrough
CT: control target
= control target key end

     0   :  { %vm44_vm0 = vcmask 130048   ;;  %vm172_vm1 = vcmask 64512   ;;  %vm854_vm2 = vmmov 0   ;;  %vm562_vm3 = vcmask 261120   ;;  %s1098_s0 = inlined_call_operand.vmem [shape: f32[32,16], index: 0, kind: input, shape index: {}]   ;;  %s1099_s1 = inlined_call_operand.vmem [shape: f32[16,8], index: 1, kind: input, shape index: {}]   ;;  %s1100_s2 = inlined_call_operand.vmem [shape: f32[16,128], index: 2, kind: input, shape index: {}]   ;;  %s1101_s4 = inlined_call_operand.vmem [shape: f32[8,128], index: 4, kind: input, shape index: {}]   ;;  %s1102_s5 = inlined_call_operand.vmem [shape: f32[128,16], index: 5, kind: input, shape index: {}]   ;;  %s1103_s3 = inlined_call_operand.vmem [shape: f32[1,128], index: 3, kind: input, shape index: {}]   ;;  %s1104_s6 = inlined_call_operand.vmem [shape: f32[32,16], index: 6, kind: input, shape index: {}]   ;;  %s1105_s9 = inlined_call_operand.vmem [shape: f32[32,16], index: 9, kind: output, shape index: {0}]   ;;  %s1106_s8 = inlined_call_operand.<no memory space> [shape: f32[1,1], index: 8, kind: input, shape index: {}]   ;;  %s1107_s7 = inlined_call_operand.vmem [shape: f32[4,32], index: 7, kind: input, shape index: {}]   ;;  %s1108_s10 = inlined_call_operand.vmem [shape: f32[4,1], index: 10, kind: output, shape index: {1}]  }
   0x1   :  { %v914_v0 = vld [vmem:[%s1098_s0] sm:$0xff]  ;;  %v919_v1 = vld [vmem:[%s1098_s0 + $0x10] sm:$0xff]  ;;  %v924_v2 = vld [vmem:[%s1098_s0 + $0x8] sm:$0xff]  ;;  %vm636_vm4 = vcmask 3072  }
   0x2   :  { %v40_v3 = vmul.f32 %v914_v0, %v914_v0  ;;  %v42_v4 = vmul.f32 %v919_v1, %v919_v1  ;;  %v41_v5 = vmul.f32 %v924_v2, %v924_v2  ;;  %v935_v6 = vld [vmem:[%s1098_s0 + $0x18] sm:$0xff]  ;;  %v69_v12 = vld [vmem:[%s1099_s1] sm:$0xff]  ;;  %v70_v13 = vld [vmem:[%s1099_s1 + $0x8] sm:$0xff] }
   0x3   :  { %v43_v7 = vmul.f32 %v935_v6, %v935_v6  ;;  %v780_v14 = vpack.c.bf16 %v70_v13, %v69_v12  ;;  %v217_v43 = vld [vmem:[%s1100_s2] sm:$0xff]  ;;  %v218_v44 = vld [vmem:[%s1100_s2 + $0x8] sm:$0xff] }
   0x4   :  { %v45_v8 = vsel %vm44_vm0, %v40_v3, 0.0  ;;  %v51_v9 = vsel %vm44_vm0, %v42_v4, 0.0  ;;  %v48_v10 = vsel %vm44_vm0, %v41_v5, 0.0  ;;  %v784_v45 = vpack.c.bf16 %v218_v44, %v217_v43  ;;  %v323_v5 = vld [vmem:[%s1101_s4] sm:$0xff]  ;;  %v439_v44 = vld [vmem:[%s1102_s5 + $0x70] sm:$0xff] }
   0x5   :  { %46 = vadd.xlane.f32.xlu0 %v45_v8  ;;  %52 = vadd.xlane.f32.xlu1 %v51_v9  ;;  %v54_v11 = vsel %vm44_vm0, %v43_v7, 0.0  ;;  %v425_v7 = vld [vmem:[%s1102_s5] sm:$0xff]  ;;  %v426_v8 = vld [vmem:[%s1102_s5 + $0x8] sm:$0xff]  ;;  %v427_v9 = vld [vmem:[%s1102_s5 + $0x10] sm:$0xff] }
   0x6   :  { %781 = vmatprep.subr.bf16.mxu0 %v780_v14  ;;  %v429_v13 = vld [vmem:[%s1102_s5 + $0x20] sm:$0xff] }
   0x7   :  { %783 = vmatpush3.bf16.msra.mxu0 %v780_v14  ;;  %v430_v14 = vld [vmem:[%s1102_s5 + $0x28] sm:$0xff] }
   0x8   :  { %785 = vmatprep.subr.bf16.mxu0 %v784_v45 }
   0x9   :  { %49 = vadd.xlane.f32.xlu0 %v48_v10  ;;  %55 = vadd.xlane.f32.xlu1 %v54_v11  ;;  %v788_v10 = vpack.c.bf16 %v426_v8, %v425_v7  ;;  %v428_v11 = vld [vmem:[%s1102_s5 + $0x18] sm:$0xff] }
   0xa   :  { %v792_v12 = vpack.c.bf16 %v428_v11, %v427_v9  ;;  %v537_v8 = vld [vmem:[%s1104_s6 + $0x18] sm:$0xff]  ;;  %v536_v11 = vld [vmem:[%s1104_s6 + $0x10] sm:$0xff] }
   0xb   :  { %789 = vmatprep.subr.bf16.mxu1 %v788_v10 }
   0xc   :  { %791 = vmatpush3.bf16.msra.mxu1 %v788_v10 }
   0xd   :  { %793 = vmatprep.subr.bf16.mxu1 %v792_v12 }
  0x10   :  { %795 = vmatpush3.bf16.msra.mxu1 %v792_v12 }
  0x92   :  { %v47_v15 = vpop.xlane.xlu0 %46  ;;  %v53_v16 = vpop.xlane.xlu1 %52 }
  0x93   :  { %v57_v17 = vmax.f32 %v47_v15, 1e-16  ;;  %v59_v18 = vmax.f32 %v53_v16, 1e-16  ;;  %v796_v15 = vpack.c.bf16 %v430_v14, %v429_v13  ;;  %v431_v16 = vld [vmem:[%s1102_s5 + $0x30] sm:$0xff] }
  0x95   :  { %829 = vrsqrt.f32 %v57_v17  ;;  %v432_v17 = vld [vmem:[%s1102_s5 + $0x38] sm:$0xff]  ;;  %797 = vmatprep.subr.bf16.mxu1 %v796_v15 }
  0x96   :  { %831 = vrsqrt.f32 %v59_v18  ;;  %v50_v19 = vpop.xlane.xlu0 %49  ;;  %v56_v20 = vpop.xlane.xlu1 %55  ;;  %v800_v18 = vpack.c.bf16 %v432_v17, %v431_v16  ;;  %799 = vmatpush3.bf16.msra.mxu1 %v796_v15  ;;  %v853_v16 = vmov 0.0|0.0   ;;  %v855_v17 = vmov 0.0  }
  0x97   :  { %v58_v21 = vmax.f32 %v50_v19, 1e-16  ;;  %v60_v22 = vmax.f32 %v56_v20, 1e-16  ;;  %v433_v19 = vld [vmem:[%s1102_s5 + $0x40] sm:$0xff]  ;;  %v434_v20 = vld [vmem:[%s1102_s5 + $0x48] sm:$0xff] }
  0x98   :  { %801 = vmatprep.subr.bf16.mxu1 %v800_v18 }
  0x99   :  { %833 = vrsqrt.f32 %v58_v21  ;;  %v804_v21 = vpack.c.bf16 %v434_v20, %v433_v19 }
  0x9a   :  { %835 = vrsqrt.f32 %v60_v22  ;;  %v435_v22 = vld [vmem:[%s1102_s5 + $0x50] sm:$0xff]  ;;  %803 = vmatpush3.bf16.msra.mxu1 %v800_v18  ;;  %v16_v18 = vstv %s1106_s8 }
  0x9b   :  { %805 = vmatprep.subr.bf16.mxu1 %v804_v21  ;;  %17 = vst [vmem:[#allocation2] sm:$0x1] %v16_v18 }
  0x9e   :  { %807 = vmatpush3.bf16.msra.mxu1 %v804_v21 }
  0x9f   :  { %v830_v23 = vpop.eup %829 }
  0xa0   :  { %v832_v24 = vpop.eup %831  ;;  %v65_v25 = vmul.f32 %v830_v23, %v914_v0  ;;  %v436_v23 = vld [vmem:[%s1102_s5 + $0x58] sm:$0xff] }
  0xa1   :  { %v67_v27 = vmul.f32 %v832_v24, %v919_v1  ;;  %v808_v24 = vpack.c.bf16 %v436_v23, %v435_v22 }
  0xa2   :  { %707 = vmatprep.mubr.msk.f32.mxu0 %vm44_vm0, %v65_v25  ;;  %v437_v25 = vld [vmem:[%s1102_s5 + $0x60] sm:$0xff] }
  0xa3   :  { %v834_v26 = vpop.eup %833  ;;  %809 = vmatprep.subr.bf16.mxu1 %v808_v24 }
  0xa4   :  { %v836_v28 = vpop.eup %835  ;;  %v66_v29 = vmul.f32 %v834_v26, %v924_v2  ;;  %v438_v26 = vld [vmem:[%s1102_s5 + $0x68] sm:$0xff]  ;;  %811 = vmatpush3.bf16.msra.mxu1 %v808_v24 }
  0xa5   :  { %v68_v30 = vmul.f32 %v836_v28, %v935_v6 }
  0xa6   :  { %708 = vmatmul.mubr.msk.f32.vlgmr.msra.gmra.mrb[0].mxu0 %vm44_vm0, %v66_v29 }
  0xa7   :  { %710 = vmatprep.mubr.msk.f32.mxu0 %vm44_vm0, %v67_v27  ;;  %787 = vmatpush3.bf16.msra.mxu0 %v784_v45  ;;  %v812_v27 = vpack.c.bf16 %v438_v26, %v437_v25  ;;  %v440_v45 = vld [vmem:[%s1102_s5 + $0x78] sm:$0xff]  ;;  %v554_v25 = vld [vmem:[%s1107_s7] sm:$0xf] }
  0xa8   :  { %723 = vmatprep.subr.mxu0 %v323_v5  ;;  %v659_v26 = vld [vmem:[#allocation2] ss:$0 sm:$0xff] }
  0xa9   :  { %813 = vmatprep.subr.bf16.mxu1 %v812_v27 }
  0xaa   :  { %711 = vmatmul.mubr.msk.f32.gmra.mrb[2].mxu0 %vm44_vm0, %v68_v30  ;;  %815 = vmatpush3.bf16.msra.mxu1 %v812_v27 }
  0xab   :  { %717 = vmatprep.mubr.msk.f32.mxu0 %vm44_vm0, %v914_v0 }
  0xae   :  { %718 = vmatmul.mubr.msk.f32.vlgmr.msra.gmra.mrb[4].mxu0 %vm44_vm0, %v924_v2 }
  0xaf   :  { %720 = vmatprep.mubr.msk.f32.mxu0 %vm44_vm0, %v919_v1  ;;  %724 = vmatpush3.msra.mxu0 %v323_v5 }
  0xb0   :  { %820 = vmatprep.subr.bf16.mxu0 %v853_v16 }
  0xb2   :  { %721 = vmatmul.mubr.msk.f32.gmra.mrb[6].mxu0 %vm44_vm0, %v935_v6 }
 0x179   :  { %v709_v31 = vpop.f32.mrb[0].mxu0 }
 0x17a   :  { %v169_v32 = vmul.f32 0.1, %v709_v31  ;;  %v149_v33 = vpop.f32.mrb[1].mxu0 }
 0x17b   :  { %v168_v34 = vmul.f32 0.1, %v149_v33 }
 0x17c   :  { %v176_v35 = vsel %vm172_vm1, %v169_v32, -inf }
 0x17d   :  { %177 = vmax.xlane.f32.xlu1 %v176_v35  ;;  %v712_v36 = vpop.f32.mrb[2].mxu0  ;;  %v173_v37 = vsel %vm172_vm1, %v168_v34, -inf }
 0x17e   :  { %v171_v38 = vmul.f32 0.1, %v712_v36  ;;  %174 = vmax.xlane.f32.xlu0 %v173_v37  ;;  %v159_v39 = vpop.f32.mrb[3].mxu0 }
 0x17f   :  { %v170_v40 = vmul.f32 0.1, %v159_v39 }
 0x180   :  { %v182_v41 = vsel %vm172_vm1, %v171_v38, -inf }
 0x181   :  { %183 = vmax.xlane.f32.xlu1 %v182_v41  ;;  %v179_v42 = vsel %vm172_vm1, %v170_v40, -inf  ;;  %v719_v28 = vpop.f32.mrb[4].mxu0 }
 0x182   :  { %180 = vmax.xlane.f32.xlu0 %v179_v42  ;;  %v304_v29 = vpop.f32.mrb[5].mxu0 }
 0x185   :  { %v722_v30 = vpop.f32.mrb[6].mxu0 }
 0x186   :  { %v314_v31 = vpop.f32.mrb[7].mxu0 }
 0x20a   :  { %v178_v46 = vpop.xlane.xlu1 %177 }
 0x20b   :  { %v186_v47 = vsub.f32 %v169_v32, %v178_v46  ;;  %v175_v48 = vpop.xlane.xlu0 %174  ;;  %v816_v46 = vpack.c.bf16 %v440_v45, %v439_v44 }
 0x20c   :  { %v185_v49 = vsub.f32 %v168_v34, %v175_v48 }
 0x20d   :  { %v191_v50 = vmul.f32 1.442695, %v186_v47  ;;  %817 = vmatprep.subr.bf16.mxu1 %v816_v46  ;;  %v650_v47 = vld [vmem:[%s1103_s3] ss:$0 sm:$0xff] }
 0x20e   :  { %v189_v51 = vmul.f32 1.442695, %v185_v49  ;;  %v184_v52 = vpop.xlane.xlu1 %183  ;;  %819 = vmatpush3.bf16.msra.mxu1 %v816_v46  ;;  %v310_v48 = vadd.f32 %v719_v28, %v650_v47  ;;  %v305_v49 = vadd.f32 %v650_v47, %v304_v29 }
 0x20f   :  { %837 = vpow2.f32 %v191_v50  ;;  %v188_v53 = vsub.f32 %v171_v38, %v184_v52  ;;  %v181_v54 = vpop.xlane.xlu0 %180 }
 0x210   :  { %839 = vpow2.f32 %v189_v51  ;;  %v187_v55 = vsub.f32 %v170_v40, %v181_v54  ;;  %v320_v54 = vadd.f32 %v722_v30, %v650_v47 }
 0x211   :  { %v195_v56 = vmul.f32 1.442695, %v188_v53 }
 0x212   :  { %v193_v57 = vmul.f32 1.442695, %v187_v55  ;;  %v315_v55 = vadd.f32 %v650_v47, %v314_v31 }
 0x213   :  { %841 = vpow2.f32 %v195_v56 }
 0x214   :  { %843 = vpow2.f32 %v193_v57 }
 0x219   :  { %v975_v58 = vpop.eup %837 }
 0x21a   :  { %v977_v59 = vpop.eup %839  ;;  %v200_v60 = vsel %vm172_vm1, %v975_v58, 0.0 }
 0x21b   :  { %201 = vadd.xlane.f32.xlu1 %v200_v60  ;;  %v197_v61 = vsel %vm172_vm1, %v977_v59, 0.0 }
 0x21c   :  { %198 = vadd.xlane.f32.xlu0 %v197_v61  ;;  %v535_v61 = vld [vmem:[%s1104_s6 + $0x8] sm:$0xff] }
 0x21d   :  { %v983_v62 = vpop.eup %841 }
 0x21e   :  { %v985_v63 = vpop.eup %843  ;;  %v206_v3 = vsel %vm172_vm1, %v983_v62, 0.0 }
 0x21f   :  { %207 = vadd.xlane.f32.xlu1 %v206_v3  ;;  %v203_v4 = vsel %vm172_vm1, %v985_v63, 0.0  ;;  %v534_v3 = vld [vmem:[%s1104_s6] sm:$0xff] }
 0x220   :  { %204 = vadd.xlane.f32.xlu0 %v203_v4 }
 0x2a8   :  { %v202_v32 = vpop.xlane.xlu1 %201 }
 0x2a9   :  { %845 = vrcp.f32 %v202_v32  ;;  %v199_v33 = vpop.xlane.xlu0 %198 }
 0x2aa   :  { %847 = vrcp.f32 %v199_v33 }
 0x2ac   :  { %v208_v34 = vpop.xlane.xlu1 %207 }
 0x2ad   :  { %849 = vrcp.f32 %v208_v34  ;;  %v205_v35 = vpop.xlane.xlu0 %204 }
 0x2ae   :  { %851 = vrcp.f32 %v205_v35 }
 0x2b3   :  { %v846_v36 = vpop.eup %845 }
 0x2b4   :  { %v848_v37 = vpop.eup %847  ;;  %v214_v39 = vmul.f32 %v846_v36, %v975_v58 }
 0x2b5   :  { %v213_v38 = vmul.f32 %v848_v37, %v977_v59 }
 0x2b7   :  { %v850_v40 = vpop.eup %849  ;;  %725 = vmatprep.mubr.msk.f32.mxu0 %vm172_vm1, %v213_v38 }
 0x2b8   :  { %v852_v41 = vpop.eup %851  ;;  %726 = vmatmul.mubr.msk.f32.vlgmr.msra.gmra.mrb[8].mxu0 %vm172_vm1, %v214_v39  ;;  %v216_v43 = vmul.f32 %v850_v40, %v983_v62 }
 0x2b9   :  { %v215_v42 = vmul.f32 %v852_v41, %v985_v63 }
 0x2bb   :  { %728 = vmatprep.mubr.msk.f32.mxu0 %vm172_vm1, %v215_v42 }
 0x2bc   :  { %729 = vmatmul.mubr.msk.f32.gmra.mrb[10].mxu0 %vm172_vm1, %v216_v43 }
 0x2bd   :  { %777 = vmatprep.mubr.msk.f32.mxu0 %vm854_vm2, %v855_v17 }
 0x38b   :  { %v727_v50 = vpop.f32.mrb[8].mxu0 }
 0x38c   :  { %v422_v51 = vmul.f32 %v727_v50, %v310_v48  ;;  %v402_v52 = vpop.f32.mrb[9].mxu0 }
 0x38d   :  { %v421_v53 = vmul.f32 %v402_v52, %v305_v49 }
 0x38f   :  { %v730_v56 = vpop.f32.mrb[10].mxu0  ;;  %763 = vmatprep.mubr.f32.mxu1 %v421_v53 }
 0x390   :  { %v424_v57 = vmul.f32 %v730_v56, %v320_v54  ;;  %v412_v58 = vpop.f32.mrb[11].mxu0  ;;  %764 = vmatmul.mubr.f32.vlgmr.msra.gmra.mrb[0].mxu1 %v422_v51 }
 0x391   :  { %v423_v59 = vmul.f32 %v412_v58, %v315_v55 }
 0x393   :  { %766 = vmatprep.mubr.f32.mxu1 %v423_v59 }
 0x394   :  { %767 = vmatmul.mubr.f32.gmra.mrb[2].mxu1 %v424_v57 }
 0x463   :  { %v765_v60 = vpop.f32.mrb[0].mxu1 }
 0x464   :  { %v527_v62 = vadd.f32 %v765_v60, %v924_v2  ;;  %v507_v63 = vpop.f32.mrb[1].mxu1 }
 0x465   :  { %v526_v4 = vadd.f32 %v507_v63, %v914_v0 }
 0x466   :  { %531 = vst.msk [vmem:[%s1105_s9 + $0x8] sm:$0xff] %vm44_vm0, %v527_v62  ;;  %v539_v5 = vmul.f32 %v535_v61, %v527_v62 }
 0x467   :  { %530 = vst.msk [vmem:[%s1105_s9] sm:$0xff] %vm44_vm0, %v526_v4  ;;  %v768_v7 = vpop.f32.mrb[2].mxu1  ;;  %v538_v2 = vmul.f32 %v534_v3, %v526_v4 }
 0x468   :  { %v529_v9 = vadd.f32 %v768_v7, %v935_v6  ;;  %v517_v0 = vpop.f32.mrb[3].mxu1  ;;  %v545_v10 = vsel %vm44_vm0, %v539_v5, 0.0 }
 0x469   :  { %v528_v12 = vadd.f32 %v517_v0, %v919_v1  ;;  %546 = vadd.xlane.f32.xlu1 %v545_v10  ;;  %v542_v13 = vsel %vm44_vm0, %v538_v2, 0.0 }
 0x46a   :  { %533 = vst.msk [vmem:[%s1105_s9 + $0x18] sm:$0xff] %vm44_vm0, %v529_v9  ;;  %543 = vadd.xlane.f32.xlu0 %v542_v13  ;;  %v541_v14 = vmul.f32 %v537_v8, %v529_v9 }
 0x46b   :  { %532 = vst.msk [vmem:[%s1105_s9 + $0x10] sm:$0xff] %vm44_vm0, %v528_v12  ;;  %v540_v6 = vmul.f32 %v536_v11, %v528_v12 }
 0x46c   :  { %v551_v15 = vsel %vm44_vm0, %v541_v14, 0.0 }
 0x46d   :  { %552 = vadd.xlane.f32.xlu1 %v551_v15  ;;  %v548_v1 = vsel %vm44_vm0, %v540_v6, 0.0 }
 0x46e   :  { %549 = vadd.xlane.f32.xlu0 %v548_v1 }
 0x4f6   :  { %v547_v19 = vpop.xlane.xlu1 %546 }
 0x4f7   :  { %v544_v20 = vpop.xlane.xlu0 %543 }
 0x4f8   :  { %v821_v21 = vpack.c.bf16 %v547_v19, %v544_v20 }
 0x4fa   :  { %v553_v22 = vpop.xlane.xlu1 %552  ;;  %822 = vmatpush3.bf16.msra.mxu0 %v821_v21 }
 0x4fb   :  { %v550_v23 = vpop.xlane.xlu0 %549  ;;  %823 = vmatprep.subr.bf16.mxu0 %v853_v16 }
 0x4fc   :  { %v824_v24 = vpack.c.bf16 %v553_v22, %v550_v23 }
 0x4fe   :  { %825 = vmatpush3.bf16.msra.mxu0 %v824_v24 }
 0x501   :  { %778 = vmatmul.mubr.msk.f32.vlgmr.msra.gmra.mrb[12].mxu0 %vm562_vm3, %v554_v25 }
 0x5d4   :  { %v632_v27 = vpop.f32.mrb[12].mxu0 }
 0x5d5   :  { %v633_v28 = vadd.f32 %v659_v26, %v632_v27  ;;  %v779_v29 = vpop.f32.mrb[13].mxu0 }
 0x5d7   :  { %637 = vst.msk [vmem:[%s1108_s10] sm:$0xf] %vm636_vm4, %v633_v28 }

</bundles_post_ra>
